<compile_context>
chip_gen: v5e
topology: v5e:2x2
jax: 0.10.0
libtpu: 0.0.40
codegen_flags: <defaults>
</compile_context>

<pallas_src>
import functools

import jax
import jax.numpy as jnp
from jax.experimental import pallas as pl
from jax.experimental.pallas import tpu as pltpu


def _activation(y, kind):
    if kind == "relu":
        return jnp.maximum(y, 0.0)
    elif kind == "silu":
        return y * jax.nn.sigmoid(y)
    elif kind == "gelu":
        # NOTE: the module's backward uses the tanh approximation, so the
        # (default, tanh-approximate) jax.nn.gelu matches its intent.
        return jax.nn.gelu(y)
    else:
        raise ValueError(f"unknown activation {kind!r}")


def _gated_mlp_kernel(
    x_ref,
    wg_ref, ag_ref, bg_ref,      # gate: base [H, ti], LoRA A [H, r], LoRA B [r, ti]
    wu_ref, au_ref, bu_ref,      # up:   base [H, ti], LoRA A [H, r], LoRA B [r, ti]
    wd_ref, ad_ref, bd_ref,      # down: base [ti, H], LoRA A [ti, r], LoRA B [r, H]
    o_ref,
    lag_ref, lau_ref, acc_ref, accld_ref,
    *, activation_forward,
):
    f32 = jnp.float32
    j = pl.program_id(1)
    x = x_ref[...]                                           # [tm, H]

    @pl.when(j == 0)
    def _():
        # LoRA-A products depend only on the row tile -> compute once per tile.
        lag_ref[...] = jnp.dot(x, ag_ref[...], preferred_element_type=f32)
        lau_ref[...] = jnp.dot(x, au_ref[...], preferred_element_type=f32)
        acc_ref[...] = jnp.zeros_like(acc_ref)
        accld_ref[...] = jnp.zeros_like(accld_ref)

    # gate / up projections on this intermediate tile: base + LoRA (f32 accum).
    y1 = jnp.dot(x, wg_ref[...], preferred_element_type=f32)
    y1 = y1 + jnp.dot(lag_ref[...], bg_ref[...].astype(f32),
                      preferred_element_type=f32)
    y2 = jnp.dot(x, wu_ref[...], preferred_element_type=f32)
    y2 = y2 + jnp.dot(lau_ref[...], bu_ref[...].astype(f32),
                      preferred_element_type=f32)

    # gating
    x3 = (_activation(y1, activation_forward) * y2).astype(x.dtype)   # [tm, ti]

    # down projection: stream the base weight tile; accumulate across I tiles.
    acc_ref[...] += jnp.dot(x3, wd_ref[...], preferred_element_type=f32)
    accld_ref[...] += jnp.dot(x3, ad_ref[...], preferred_element_type=f32)

    @pl.when(j == pl.num_programs(1) - 1)
    def _():
        y3 = acc_ref[...] + jnp.dot(accld_ref[...], bd_ref[...].astype(f32),
                                    preferred_element_type=f32)
        o_ref[...] = y3.astype(o_ref.dtype)


def _round_up(a, b):
    return (a + b - 1) // b * b


def _pick_i_tile(I, target):
    """Largest lane-aligned tile <= target that divides I; fall back to I."""
    if I <= target:
        return I
    t = (target // 128) * 128
    while t >= 128:
        if I % t == 0:
            return t
        t -= 128
    return I


def mixed_gated_mlp(x, params, *, activation_forward="relu",
                    tm=256, ti=512, vmem_limit_bytes=64 * 1024 * 1024):
    """x: [B, S, H]; params: dict of pre-transposed dense weights + LoRA adapters.

    Returns [B, S, H].  Weights may be bf16 or f32; accumulation is always f32.
    """
    B, S, H = x.shape
    M = B * S

    wg, ag, bg = params["w_gate"], params["a_gate"], params["b_gate"]
    wu, au, bu = params["w_up"], params["a_up"], params["b_up"]
    wd, ad, bd = params["w_down"], params["a_down"], params["b_down"]
    I = wg.shape[1]
    r = ag.shape[1]

    # Row tile: as large as requested but never larger than (padded) M.
    tm_eff = min(tm, _round_up(M, 8))
    M_pad = _round_up(M, tm_eff)
    x2d = x.reshape(M, H)
    if M_pad != M:
        x2d = jnp.pad(x2d, ((0, M_pad - M), (0, 0)))

    # Intermediate (reduction) tile: lane-aligned divisor of I.
    ti_eff = _pick_i_tile(I, ti)
    n_i = I // ti_eff

    kernel = functools.partial(_gated_mlp_kernel,
                               activation_forward=activation_forward)

    out = pl.pallas_call(
        kernel,
        out_shape=jax.ShapeDtypeStruct((M_pad, H), x.dtype),
        grid_spec=pltpu.PrefetchScalarGridSpec(
            num_scalar_prefetch=0,
            grid=(M_pad // tm_eff, n_i),
            in_specs=[
                pl.BlockSpec((tm_eff, H), lambda i, j: (i, 0)),   # x (resident over j)
                pl.BlockSpec((H, ti_eff), lambda i, j: (0, j)),   # w_gate tile
                pl.BlockSpec((H, r), lambda i, j: (0, 0)),        # a_gate (full)
                pl.BlockSpec((r, ti_eff), lambda i, j: (0, j)),   # b_gate tile
                pl.BlockSpec((H, ti_eff), lambda i, j: (0, j)),   # w_up tile
                pl.BlockSpec((H, r), lambda i, j: (0, 0)),        # a_up (full)
                pl.BlockSpec((r, ti_eff), lambda i, j: (0, j)),   # b_up tile
                pl.BlockSpec((ti_eff, H), lambda i, j: (j, 0)),   # w_down tile
                pl.BlockSpec((ti_eff, r), lambda i, j: (j, 0)),   # a_down tile
                pl.BlockSpec((r, H), lambda i, j: (0, 0)),        # b_down (full)
            ],
            out_specs=pl.BlockSpec((tm_eff, H), lambda i, j: (i, 0)),
            scratch_shapes=[
                pltpu.VMEM((tm_eff, r), jnp.float32),   # x @ a_gate (hoisted)
                pltpu.VMEM((tm_eff, r), jnp.float32),   # x @ a_up   (hoisted)
                pltpu.VMEM((tm_eff, H), jnp.float32),   # down-proj accumulator
                pltpu.VMEM((tm_eff, r), jnp.float32),   # x3 @ a_down accumulator
            ],
        ),
        compiler_params=pltpu.CompilerParams(
            dimension_semantics=("parallel", "arbitrary"),
            vmem_limit_bytes=vmem_limit_bytes,
        ),
    )(x2d, wg, ag, bg, wu, au, bu, wd, ad, bd)

    return out[:M].reshape(B, S, H)


def _reference(x, params, activation_forward="relu"):
    B, S, H = x.shape
    x2d = x.reshape(B * S, H)
    y1 = x2d @ params["w_gate"] + (x2d @ params["a_gate"]) @ params["b_gate"]
    y2 = x2d @ params["w_up"] + (x2d @ params["a_up"]) @ params["b_up"]
    x3 = _activation(y1, activation_forward) * y2
    y3 = x3 @ params["w_down"] + (x3 @ params["a_down"]) @ params["b_down"]
    return y3.reshape(B, S, H)


def _init_params(key, H, I, r, dtype=jnp.float32):
    ks = jax.random.split(key, 9)
    scale = 0.05
    return {
        # dense ("dequantized 4-bit") base weights, pre-transposed to [in, out]
        "w_gate": scale * jax.random.normal(ks[0], (H, I), dtype),
        "w_up":   scale * jax.random.normal(ks[1], (H, I), dtype),
        "w_down": scale * jax.random.normal(ks[2], (I, H), dtype),
        # LoRA adapters (already .weight.T layout)
        "a_gate": scale * jax.random.normal(ks[3], (H, r), dtype),
        "b_gate": scale * jax.random.normal(ks[4], (r, I), dtype),
        "a_up":   scale * jax.random.normal(ks[5], (H, r), dtype),
        "b_up":   scale * jax.random.normal(ks[6], (r, I), dtype),
        "a_down": scale * jax.random.normal(ks[7], (I, r), dtype),
        "b_down": scale * jax.random.normal(ks[8], (r, H), dtype),
    }


if __name__ == "__main__":
    # Small but lane-dense shapes (last dims >= 128 avoid masked-store paths).
    B, S, H, I, r = 2, 16, 128, 256, 8      # batch, seq, hidden, intermediate, rank
    key = jax.random.PRNGKey(0)
    kx, kp = jax.random.split(key)

    x = jax.random.normal(kx, (B, S, H), jnp.float32)
    params = _init_params(kp, H, I, r, jnp.float32)

    # tm=16 / ti=128 exercise both grid axes (2 row tiles x 2 reduction tiles)
    # including the accumulator init/finalize path.
    y = mixed_gated_mlp(x, params, activation_forward="relu", tm=16, ti=128)
    y = jax.block_until_ready(y)

    y_ref = _reference(x, params, "relu")
    assert y.shape == (B, S, H)
    assert jnp.allclose(y, y_ref, atol=1e-4, rtol=1e-4), "mismatch vs reference"

    print("KERNEL_OK")
</pallas_src>

<mosaic_0001>
module attributes {stable_mosaic.version = 11 : i64} {
  func.func @_gated_mlp_kernel(%arg0: i32, %arg1: i32, %arg2: memref<16x128xf32, #tpu.memory_space<vmem>>, %arg3: memref<128x128xf32, #tpu.memory_space<vmem>>, %arg4: memref<128x8xf32, #tpu.memory_space<vmem>>, %arg5: memref<8x128xf32, #tpu.memory_space<vmem>>, %arg6: memref<128x128xf32, #tpu.memory_space<vmem>>, %arg7: memref<128x8xf32, #tpu.memory_space<vmem>>, %arg8: memref<8x128xf32, #tpu.memory_space<vmem>>, %arg9: memref<128x128xf32, #tpu.memory_space<vmem>>, %arg10: memref<128x8xf32, #tpu.memory_space<vmem>>, %arg11: memref<8x128xf32, #tpu.memory_space<vmem>>, %arg12: memref<16x128xf32, #tpu.memory_space<vmem>>, %arg13: memref<16x8xf32, #tpu.memory_space<vmem>>, %arg14: memref<16x8xf32, #tpu.memory_space<vmem>>, %arg15: memref<16x128xf32, #tpu.memory_space<vmem>>, %arg16: memref<16x8xf32, #tpu.memory_space<vmem>>) attributes {dimension_semantics = [#tpu.dimension_semantics<parallel>, #tpu.dimension_semantics<arbitrary>], iteration_bounds = array<i64: 2, 2>, scalar_prefetch = 0 : i64, scratch_operands = 4 : i64, tpu.core_type = #tpu.core_type<tc>, window_params = [{transform_indices = @transform_0, window_bounds = array<i64: 16, 128>}, {transform_indices = @transform_1, window_bounds = array<i64: 128, 128>}, {pipeline_mode = #tpu.pipeline_mode<synchronous>, transform_indices = @transform_2, window_bounds = array<i64: 128, 8>}, {transform_indices = @transform_3, window_bounds = array<i64: 8, 128>}, {transform_indices = @transform_4, window_bounds = array<i64: 128, 128>}, {pipeline_mode = #tpu.pipeline_mode<synchronous>, transform_indices = @transform_5, window_bounds = array<i64: 128, 8>}, {transform_indices = @transform_6, window_bounds = array<i64: 8, 128>}, {transform_indices = @transform_7, window_bounds = array<i64: 128, 128>}, {transform_indices = @transform_8, window_bounds = array<i64: 128, 8>}, {pipeline_mode = #tpu.pipeline_mode<synchronous>, transform_indices = @transform_9, window_bounds = array<i64: 8, 128>}, {transform_indices = @transform_10, window_bounds = array<i64: 16, 128>}]} {
    %c0 = arith.constant 0 : index
    %c0_0 = arith.constant 0 : index
    %0 = vector.load %arg2[%c0, %c0_0] : memref<16x128xf32, #tpu.memory_space<vmem>>, vector<16x128xf32>
    %c0_i32 = arith.constant 0 : i32
    %1 = arith.cmpi eq, %arg1, %c0_i32 : i32
    %2 = arith.extui %1 : i1 to i32
    %c0_i32_1 = arith.constant 0 : i32
    %3 = arith.cmpi ne, %2, %c0_i32_1 : i32
    scf.if %3 {
      %c0_33 = arith.constant 0 : index
      %c0_34 = arith.constant 0 : index
      %32 = vector.load %arg4[%c0_33, %c0_34] : memref<128x8xf32, #tpu.memory_space<vmem>>, vector<128x8xf32>
      %cst_35 = arith.constant dense<0.000000e+00> : vector<16x8xf32>
      %33 = tpu.matmul %0, %32, %cst_35 {dimension_numbers = #tpu.dot_dimension_numbers<[1], [0], [0], [1], [0, 0, 1, 1], [], []>} : vector<16x128xf32>, vector<128x8xf32>, vector<16x8xf32> -> vector<16x8xf32>
      %c0_36 = arith.constant 0 : index
      %c0_37 = arith.constant 0 : index
      %34 = vector.load %arg13[%c0_36, %c0_37] : memref<16x8xf32, #tpu.memory_space<vmem>>, vector<16x8xf32>
      tpu.vector_store %arg13[%c0_36, %c0_37], %33 {strides = array<i32>} : memref<16x8xf32, #tpu.memory_space<vmem>>, vector<16x8xf32>,
      %c0_38 = arith.constant 0 : index
      %c0_39 = arith.constant 0 : index
      %35 = vector.load %arg7[%c0_38, %c0_39] : memref<128x8xf32, #tpu.memory_space<vmem>>, vector<128x8xf32>
      %cst_40 = arith.constant dense<0.000000e+00> : vector<16x8xf32>
      %36 = tpu.matmul %0, %35, %cst_40 {dimension_numbers = #tpu.dot_dimension_numbers<[1], [0], [0], [1], [0, 0, 1, 1], [], []>} : vector<16x128xf32>, vector<128x8xf32>, vector<16x8xf32> -> vector<16x8xf32>
      %c0_41 = arith.constant 0 : index
      %c0_42 = arith.constant 0 : index
      %37 = vector.load %arg14[%c0_41, %c0_42] : memref<16x8xf32, #tpu.memory_space<vmem>>, vector<16x8xf32>
      tpu.vector_store %arg14[%c0_41, %c0_42], %36 {strides = array<i32>} : memref<16x8xf32, #tpu.memory_space<vmem>>, vector<16x8xf32>,
      %cst_43 = arith.constant 0.000000e+00 : f32
      %38 = vector.broadcast %cst_43 : f32 to vector<16x128xf32>
      %c0_44 = arith.constant 0 : index
      %c0_45 = arith.constant 0 : index
      %39 = vector.load %arg15[%c0_44, %c0_45] : memref<16x128xf32, #tpu.memory_space<vmem>>, vector<16x128xf32>
      tpu.vector_store %arg15[%c0_44, %c0_45], %38 {strides = array<i32>} : memref<16x128xf32, #tpu.memory_space<vmem>>, vector<16x128xf32>,
      %cst_46 = arith.constant 0.000000e+00 : f32
      %40 = vector.broadcast %cst_46 : f32 to vector<16x8xf32>
      %c0_47 = arith.constant 0 : index
      %c0_48 = arith.constant 0 : index
      %41 = vector.load %arg16[%c0_47, %c0_48] : memref<16x8xf32, #tpu.memory_space<vmem>>, vector<16x8xf32>
      tpu.vector_store %arg16[%c0_47, %c0_48], %40 {strides = array<i32>} : memref<16x8xf32, #tpu.memory_space<vmem>>, vector<16x8xf32>,
    } else {
    }
    %c0_2 = arith.constant 0 : index
    %c0_3 = arith.constant 0 : index
    %4 = vector.load %arg3[%c0_2, %c0_3] : memref<128x128xf32, #tpu.memory_space<vmem>>, vector<128x128xf32>
    %cst = arith.constant dense<0.000000e+00> : vector<16x128xf32>
    %5 = tpu.matmul %0, %4, %cst {dimension_numbers = #tpu.dot_dimension_numbers<[1], [0], [0], [1], [0, 0, 1, 1], [], []>} : vector<16x128xf32>, vector<128x128xf32>, vector<16x128xf32> -> vector<16x128xf32>
    %c0_4 = arith.constant 0 : index
    %c0_5 = arith.constant 0 : index
    %6 = vector.load %arg13[%c0_4, %c0_5] : memref<16x8xf32, #tpu.memory_space<vmem>>, vector<16x8xf32>
    %c0_6 = arith.constant 0 : index
    %c0_7 = arith.constant 0 : index
    %7 = vector.load %arg5[%c0_6, %c0_7] : memref<8x128xf32, #tpu.memory_space<vmem>>, vector<8x128xf32>
    %cst_8 = arith.constant dense<0.000000e+00> : vector<16x128xf32>
    %8 = tpu.matmul %6, %7, %cst_8 {dimension_numbers = #tpu.dot_dimension_numbers<[1], [0], [0], [1], [0, 0, 1, 1], [], []>} : vector<16x8xf32>, vector<8x128xf32>, vector<16x128xf32> -> vector<16x128xf32>
    %9 = arith.addf %5, %8 : vector<16x128xf32>
    %c0_9 = arith.constant 0 : index
    %c0_10 = arith.constant 0 : index
    %10 = vector.load %arg6[%c0_9, %c0_10] : memref<128x128xf32, #tpu.memory_space<vmem>>, vector<128x128xf32>
    %cst_11 = arith.constant dense<0.000000e+00> : vector<16x128xf32>
    %11 = tpu.matmul %0, %10, %cst_11 {dimension_numbers = #tpu.dot_dimension_numbers<[1], [0], [0], [1], [0, 0, 1, 1], [], []>} : vector<16x128xf32>, vector<128x128xf32>, vector<16x128xf32> -> vector<16x128xf32>
    %c0_12 = arith.constant 0 : index
    %c0_13 = arith.constant 0 : index
    %12 = vector.load %arg14[%c0_12, %c0_13] : memref<16x8xf32, #tpu.memory_space<vmem>>, vector<16x8xf32>
    %c0_14 = arith.constant 0 : index
    %c0_15 = arith.constant 0 : index
    %13 = vector.load %arg8[%c0_14, %c0_15] : memref<8x128xf32, #tpu.memory_space<vmem>>, vector<8x128xf32>
    %cst_16 = arith.constant dense<0.000000e+00> : vector<16x128xf32>
    %14 = tpu.matmul %12, %13, %cst_16 {dimension_numbers = #tpu.dot_dimension_numbers<[1], [0], [0], [1], [0, 0, 1, 1], [], []>} : vector<16x8xf32>, vector<8x128xf32>, vector<16x128xf32> -> vector<16x128xf32>
    %15 = arith.addf %11, %14 : vector<16x128xf32>
    %cst_17 = arith.constant 0.000000e+00 : f32
    %16 = vector.broadcast %cst_17 : f32 to vector<16x128xf32>
    %17 = arith.maximumf %9, %16 : vector<16x128xf32>
    %18 = arith.mulf %17, %15 : vector<16x128xf32>
    %c0_18 = arith.constant 0 : index
    %c0_19 = arith.constant 0 : index
    %19 = vector.load %arg15[%c0_18, %c0_19] : memref<16x128xf32, #tpu.memory_space<vmem>>, vector<16x128xf32>
    %c0_20 = arith.constant 0 : index
    %c0_21 = arith.constant 0 : index
    %20 = vector.load %arg9[%c0_20, %c0_21] : memref<128x128xf32, #tpu.memory_space<vmem>>, vector<128x128xf32>
    %cst_22 = arith.constant dense<0.000000e+00> : vector<16x128xf32>
    %21 = tpu.matmul %18, %20, %cst_22 {dimension_numbers = #tpu.dot_dimension_numbers<[1], [0], [0], [1], [0, 0, 1, 1], [], []>} : vector<16x128xf32>, vector<128x128xf32>, vector<16x128xf32> -> vector<16x128xf32>
    %22 = arith.addf %19, %21 : vector<16x128xf32>
    %c0_23 = arith.constant 0 : index
    %c0_24 = arith.constant 0 : index
    %23 = vector.load %arg15[%c0_23, %c0_24] : memref<16x128xf32, #tpu.memory_space<vmem>>, vector<16x128xf32>
    tpu.vector_store %arg15[%c0_23, %c0_24], %22 {strides = array<i32>} : memref<16x128xf32, #tpu.memory_space<vmem>>, vector<16x128xf32>,
    %c0_25 = arith.constant 0 : index
    %c0_26 = arith.constant 0 : index
    %24 = vector.load %arg16[%c0_25, %c0_26] : memref<16x8xf32, #tpu.memory_space<vmem>>, vector<16x8xf32>
    %c0_27 = arith.constant 0 : index
    %c0_28 = arith.constant 0 : index
    %25 = vector.load %arg10[%c0_27, %c0_28] : memref<128x8xf32, #tpu.memory_space<vmem>>, vector<128x8xf32>
    %cst_29 = arith.constant dense<0.000000e+00> : vector<16x8xf32>
    %26 = tpu.matmul %18, %25, %cst_29 {dimension_numbers = #tpu.dot_dimension_numbers<[1], [0], [0], [1], [0, 0, 1, 1], [], []>} : vector<16x128xf32>, vector<128x8xf32>, vector<16x8xf32> -> vector<16x8xf32>
    %27 = arith.addf %24, %26 : vector<16x8xf32>
    %c0_30 = arith.constant 0 : index
    %c0_31 = arith.constant 0 : index
    %28 = vector.load %arg16[%c0_30, %c0_31] : memref<16x8xf32, #tpu.memory_space<vmem>>, vector<16x8xf32>
    tpu.vector_store %arg16[%c0_30, %c0_31], %27 {strides = array<i32>} : memref<16x8xf32, #tpu.memory_space<vmem>>, vector<16x8xf32>,
    %c1_i32 = arith.constant 1 : i32
    %29 = arith.cmpi eq, %arg1, %c1_i32 : i32
    %30 = arith.extui %29 : i1 to i32
    %c0_i32_32 = arith.constant 0 : i32
    %31 = arith.cmpi ne, %30, %c0_i32_32 : i32
    scf.if %31 {
      %c0_33 = arith.constant 0 : index
      %c0_34 = arith.constant 0 : index
      %32 = vector.load %arg15[%c0_33, %c0_34] : memref<16x128xf32, #tpu.memory_space<vmem>>, vector<16x128xf32>
      %c0_35 = arith.constant 0 : index
      %c0_36 = arith.constant 0 : index
      %33 = vector.load %arg16[%c0_35, %c0_36] : memref<16x8xf32, #tpu.memory_space<vmem>>, vector<16x8xf32>
      %c0_37 = arith.constant 0 : index
      %c0_38 = arith.constant 0 : index
      %34 = vector.load %arg11[%c0_37, %c0_38] : memref<8x128xf32, #tpu.memory_space<vmem>>, vector<8x128xf32>
      %cst_39 = arith.constant dense<0.000000e+00> : vector<16x128xf32>
      %35 = tpu.matmul %33, %34, %cst_39 {dimension_numbers = #tpu.dot_dimension_numbers<[1], [0], [0], [1], [0, 0, 1, 1], [], []>} : vector<16x8xf32>, vector<8x128xf32>, vector<16x128xf32> -> vector<16x128xf32>
      %36 = arith.addf %32, %35 : vector<16x128xf32>
      %c0_40 = arith.constant 0 : index
      %c0_41 = arith.constant 0 : index
      %37 = vector.load %arg12[%c0_40, %c0_41] : memref<16x128xf32, #tpu.memory_space<vmem>>, vector<16x128xf32>
      tpu.vector_store %arg12[%c0_40, %c0_41], %36 {strides = array<i32>} : memref<16x128xf32, #tpu.memory_space<vmem>>, vector<16x128xf32>,
    } else {
    }
    return
  }
  func.func @transform_0(%arg0: i32, %arg1: i32) -> (i32, i32) {
    %c0_i32 = arith.constant 0 : i32
    %c0_i32_0 = arith.constant 0 : i32
    return %arg0, %c0_i32 : i32, i32
  }
  func.func @transform_1(%arg0: i32, %arg1: i32) -> (i32, i32) {
    %c0_i32 = arith.constant 0 : i32
    %c0_i32_0 = arith.constant 0 : i32
    return %c0_i32, %arg1 : i32, i32
  }
  func.func @transform_2(%arg0: i32, %arg1: i32) -> (i32, i32) {
    %c0_i32 = arith.constant 0 : i32
    %c0_i32_0 = arith.constant 0 : i32
    %c0_i32_1 = arith.constant 0 : i32
    return %c0_i32, %c0_i32_0 : i32, i32
  }
  func.func @transform_3(%arg0: i32, %arg1: i32) -> (i32, i32) {
    %c0_i32 = arith.constant 0 : i32
    %c0_i32_0 = arith.constant 0 : i32
    return %c0_i32, %arg1 : i32, i32
  }
  func.func @transform_4(%arg0: i32, %arg1: i32) -> (i32, i32) {
    %c0_i32 = arith.constant 0 : i32
    %c0_i32_0 = arith.constant 0 : i32
    return %c0_i32, %arg1 : i32, i32
  }
  func.func @transform_5(%arg0: i32, %arg1: i32) -> (i32, i32) {
    %c0_i32 = arith.constant 0 : i32
    %c0_i32_0 = arith.constant 0 : i32
    %c0_i32_1 = arith.constant 0 : i32
    return %c0_i32, %c0_i32_0 : i32, i32
  }
  func.func @transform_6(%arg0: i32, %arg1: i32) -> (i32, i32) {
    %c0_i32 = arith.constant 0 : i32
    %c0_i32_0 = arith.constant 0 : i32
    return %c0_i32, %arg1 : i32, i32
  }
  func.func @transform_7(%arg0: i32, %arg1: i32) -> (i32, i32) {
    %c0_i32 = arith.constant 0 : i32
    %c0_i32_0 = arith.constant 0 : i32
    return %arg1, %c0_i32 : i32, i32
  }
  func.func @transform_8(%arg0: i32, %arg1: i32) -> (i32, i32) {
    %c0_i32 = arith.constant 0 : i32
    %c0_i32_0 = arith.constant 0 : i32
    return %arg1, %c0_i32 : i32, i32
  }
  func.func @transform_9(%arg0: i32, %arg1: i32) -> (i32, i32) {
    %c0_i32 = arith.constant 0 : i32
    %c0_i32_0 = arith.constant 0 : i32
    %c0_i32_1 = arith.constant 0 : i32
    return %c0_i32, %c0_i32_0 : i32, i32
  }
  func.func @transform_10(%arg0: i32, %arg1: i32) -> (i32, i32) {
    %c0_i32 = arith.constant 0 : i32
    %c0_i32_0 = arith.constant 0 : i32
    return %arg0, %c0_i32 : i32, i32
  }
}

</mosaic_0001>

<bundles_post_ra>
// kernel: tpu_custom_call.1
= control target key start
LH: loop header
LB: loop body
LE: loop exit
PB: predicated region body
PF: predicated region fallthrough
CT: control target
= control target key end

     0   :  { %s2033_s0 = inlined_call_operand.vmem [shape: f32[32,128], index: 0, kind: input, shape index: {}]   ;;  %s2034_s1 = inlined_call_operand.vmem [shape: f32[128,256], index: 1, kind: input, shape index: {}]   ;;  %s2035_s2 = inlined_call_operand.vmem [shape: f32[128,8], index: 2, kind: input, shape index: {}]   ;;  %s2036_s3 = inlined_call_operand.vmem [shape: f32[8,256], index: 3, kind: input, shape index: {}]   ;;  %s2037_s4 = inlined_call_operand.hbm [shape: f32[128,256], index: 4, kind: input, shape index: {}]   ;;  %s2038_s5 = inlined_call_operand.vmem [shape: f32[128,8], index: 5, kind: input, shape index: {}]   ;;  %s2039_s6 = inlined_call_operand.vmem [shape: f32[8,256], index: 6, kind: input, shape index: {}]   ;;  %s2040_s7 = inlined_call_operand.hbm [shape: f32[256,128], index: 7, kind: input, shape index: {}]   ;;  %s2041_s8 = inlined_call_operand.vmem [shape: f32[256,8], index: 8, kind: input, shape index: {}]   ;;  %s2042_s9 = inlined_call_operand.vmem [shape: f32[8,128], index: 9, kind: input, shape index: {}]   ;;  %s2043_s10 = inlined_call_operand.hbm [shape: f32[32,128], index: 10, kind: output, shape index: {}]  }
   0x1   :  { %2057 = sst [smem:[#allocation26_spill]] %s2034_s1 }
   0x2   :  { %2058 = sst [smem:[#allocation27_spill]] %s2035_s2 }
   0x3   :  { %2059 = sst [smem:[#allocation28_spill]] %s2038_s5 }
   0x4   :  { %2060 = sst [smem:[#allocation29_spill]] %s2041_s8 }
   0x5   :  { %2061 = sst [smem:[#allocation30_spill]] %s2042_s9 }
   0x6   :  { %2062 = sst [smem:[#allocation31_spill]] %s2043_s10 }
   0x7   :  { %15 = vsyncpa [#allocation8], 0 }
   0x8   :  { %17 = vsyncpa [#allocation8 + $0x1], 0 }
   0x9   :  { %18 = vsyncpa [#allocation11], 0 }
   0xa   :  { %20 = vsyncpa [#allocation11 + $0x1], 0 }
   0xb   :  { %21 = vsyncpa [#allocation9], 0 }
   0xc   :  { %23 = vsyncpa [#allocation9 + $0x1], 0  ;;  %s1609_s13 = smov 0   ;;  %s1611_s14 = smov 0  }
   0xd   :  { %s1613_s15 = smov 0   ;;  %s1615_s16 = smov 0  }
   0xe   :  { %s1617_s17 = smov 0   ;;  %s1619_s18 = smov 0  }
   0xf   :  { %s1621_s19 = smov 0   ;;  %s1623_s20 = smov 0  }
  0x10   :  { %s1625_s21 = smov 0   ;;  %s1627_s22 = smov 0  }
  0x11   :  { %s1629_s23 = smov 0  }
  0x12 LB: > { %2063 = sst [smem:[#allocation16_spill]] %s1506_s13  ;;  %s1189_s24 = sadd.s32 4294967295, %s1546_s23   ;;  %s1546_s23 = sphi %s1629_s23, %s29_s23   ;;  %s1542_s22 = sphi %s1627_s22, %s2093_s22   ;;  %s1538_s21 = sphi %s1625_s21, %s2099_s21   ;;  %s1534_s20 = sphi %s1623_s20, %s2091_s20   ;;  %s1530_s19 = sphi %s1621_s19, %s2098_s19   ;;  %s1526_s18 = sphi %s1619_s18, %s2090_s18   ;;  %s1522_s17 = sphi %s1617_s17, %s2097_s17   ;;  %s1518_s16 = sphi %s1615_s16, %s2096_s16   ;;  %s1514_s15 = sphi %s1613_s15, %s2088_s15   ;;  %s1510_s14 = sphi %s1611_s14, %s2095_s14   ;;  %s1506_s13 = sphi %s1609_s13, %s2094_s13  }
  0x13   : > { %2064 = sst [smem:[#allocation17_spill]] %s1514_s15  ;;  %s1190_s25 = sadd.s32 4294967294, %s1546_s23  }
  0x14   : > { %2065 = sst [smem:[#allocation18_spill]] %s1526_s18  ;;  %s38_s26 = sadd.s32 1, %s1538_s21 }
  0x15   : > { %2066 = sst [smem:[#allocation19_spill]] %s1542_s22  ;;  %s41_s27 = sadd.s32 1, %s1542_s22 }
  0x16   : > { %p39_p0 = scmp.ge.s32.totalorder %s38_s26, 2  ;;  %s74_s28 = sadd.s32 1, %s1526_s18 }
  0x17   : > { %p81_p1 = scmp.ne.s32.totalorder %s1526_s18, %s1522_s17  ;;  %p82_p2 = scmp.eq.s32.totalorder %s1546_s23, 0 }
  0x18   : > { %s2101_s26 = smov (%p39_p0, %s38_s26), 0  ;;  %s2103_s27 = smov (!%p39_p0, %s41_s27), %s1542_s22 }
  0x19   : > { %2067 = sst [smem:[#allocation20_spill]] %s2101_s26  ;;  %s71_s29 = ssub.s32 %s1538_s21, %s2101_s26 }
  0x1a   : > { %p1675_p3 = por %p82_p2, %p81_p1  ;;  %p43_p4 = scmp.ge.s32.totalorder %s2103_s27, 2 }
  0x1b   : > { %p72_p5 = scmp.eq.s32.totalorder %s71_s29, 0  ;;  %p160_p6 = scmp.ne.s32.totalorder %s1522_s17, %s1518_s16 }
  0x1c   : > { %p161_p7 = scmp.eq.s32.totalorder %s1189_s24, 0  ;;  %s2105_s27 = smov (%p43_p4, %s2103_s27), 0 }
  0x1d   : > { %2069 = sst [smem:[#allocation21_spill]] %s2105_s27  ;;  %s290_s26 = ssub.s32 %s1542_s22, %s2105_s27 }
  0x1e   : > { %s1683_s11 = scalar_select %p72_p5, %s1526_s18, %s74_s28  }
  0x1f   : > { %p1685_p8 = por %p161_p7, %p160_p6  ;;  %p291_p9 = scmp.eq.s32.totalorder %s290_s26, 0 }
  0x20   : > { %2070 = sst [smem:[#allocation22_spill]] %s1683_s11  ;;  %s293_s10 = sadd.s32 1, %s1514_s15 }
  0x21   : > { %p303_p10 = scmp.ne.s32.totalorder %s1514_s15, %s1510_s14  ;;  %p304_p11 = scmp.eq.s32.totalorder %s1189_s24, 3 }
  0x22   : > { %s1695_s9 = scalar_select %p291_p9, %s1514_s15, %s293_s10  }
  0x23   : > { %p1697_p12 = por %p304_p11, %p303_p10  ;;  %p309_p13 = scmp.ne.s32.totalorder %s1510_s14, %s1506_s13 }
  0x24   : > { %2072 = sst [smem:[#allocation23_spill]] %s1695_s9  ;;  %p310_p0 = scmp.eq.s32.totalorder %s1190_s25, 3 }
  0x25   : > { %s2073_s29 = scalar_select %p1697_p12, 1, 0 }
  0x26   : > { %p1703_p1 = por %p310_p0, %p309_p13  ;;  %p1192_p2 = scmp.ge.s32.totalorder %s1546_s23, 4 }
  0x27   : > { %2074 = sst [smem:[#allocation24_spill]] %s2073_s29 }
  0x28   : > { %s2075_s16 = scalar_select %p1703_p1, 1, 0 }
  0x29   : > { %335 = sbr.rel (%p1192_p2) target bundleno = 83 (0x53), region = 28 }
  0x2a   : > { %2076 = sst [smem:[#allocation25_spill]] %s2075_s16 }
  0x2e   : > { %347 = sbr.rel (!%p1675_p3) target bundleno = 72 (0x48), region = 36  ;;  %s349_s10 = sand.u32 (%p1675_p3), 1, %s1526_s18  }
  0x2f   : > { %s1194_s24 = sshll.u32 (%p1675_p3), %s1538_s21, 3  ;;  %s1193_s26 = sshll.u32 (%p1675_p3), %s349_s10, 7 }
  0x30   : > { %s2077_s1 = sld [smem:[#allocation26_spill]] (%p1675_p3)  ;;  %s351_s25 = scalar_lea.vmem (%p1675_p3), [#allocation6], %s1193_s26 }
  0x36   : > { %s1715_s22 = scalar_lea.vmem %s2077_s1, %s1194_s24 }
  0x37   : > { %v412_v0 = vld [vmem:[%s1715_s22] sm:$0xff]  ;;  %v414_v1 = vld [vmem:[%s1715_s22 + $0x10] sm:$0xff] }
  0x38   : > { %v416_v2 = vld [vmem:[%s1715_s22 + $0x20] sm:$0xff]  ;;  %413 = vst [vmem:[%s351_s25] sm:$0xff] %v412_v0  ;;  %v418_v3 = vld [vmem:[%s1715_s22 + $0x30] sm:$0xff] }
  0x39   : > { %415 = vst [vmem:[%s351_s25 + $0x8] sm:$0xff] %v414_v1  ;;  %v420_v4 = vld [vmem:[%s1715_s22 + $0x40] sm:$0xff]  ;;  %v422_v5 = vld [vmem:[%s1715_s22 + $0x50] sm:$0xff] }
  0x3a   : > { %417 = vst [vmem:[%s351_s25 + $0x10] sm:$0xff] %v416_v2  ;;  %v424_v6 = vld [vmem:[%s1715_s22 + $0x60] sm:$0xff]  ;;  %v426_v7 = vld [vmem:[%s1715_s22 + $0x70] sm:$0xff] }
  0x3b   : > { %419 = vst [vmem:[%s351_s25 + $0x18] sm:$0xff] %v418_v3  ;;  %v428_v8 = vld [vmem:[%s1715_s22 + $0x80] sm:$0xff]  ;;  %v430_v9 = vld [vmem:[%s1715_s22 + $0x90] sm:$0xff] }
  0x3c   : > { %421 = vst [vmem:[%s351_s25 + $0x20] sm:$0xff] %v420_v4  ;;  %v432_v10 = vld [vmem:[%s1715_s22 + $0xa0] sm:$0xff]  ;;  %v434_v11 = vld [vmem:[%s1715_s22 + $0xb0] sm:$0xff] }
  0x3d   : > { %423 = vst [vmem:[%s351_s25 + $0x28] sm:$0xff] %v422_v5  ;;  %v436_v12 = vld [vmem:[%s1715_s22 + $0xc0] sm:$0xff]  ;;  %v438_v13 = vld [vmem:[%s1715_s22 + $0xd0] sm:$0xff] }
  0x3e   : > { %425 = vst [vmem:[%s351_s25 + $0x30] sm:$0xff] %v424_v6  ;;  %v440_v14 = vld [vmem:[%s1715_s22 + $0xe0] sm:$0xff]  ;;  %v442_v15 = vld [vmem:[%s1715_s22 + $0xf0] sm:$0xff] }
  0x3f   : > { %427 = vst [vmem:[%s351_s25 + $0x38] sm:$0xff] %v426_v7 }
  0x40   : > { %429 = vst [vmem:[%s351_s25 + $0x40] sm:$0xff] %v428_v8 }
  0x41   : > { %431 = vst [vmem:[%s351_s25 + $0x48] sm:$0xff] %v430_v9 }
  0x42   : > { %433 = vst [vmem:[%s351_s25 + $0x50] sm:$0xff] %v432_v10 }
  0x43   : > { %435 = vst [vmem:[%s351_s25 + $0x58] sm:$0xff] %v434_v11 }
  0x44   : > { %437 = vst [vmem:[%s351_s25 + $0x60] sm:$0xff] %v436_v12 }
  0x45   : > { %439 = vst [vmem:[%s351_s25 + $0x68] sm:$0xff] %v438_v13 }
  0x46   : > { %441 = vst [vmem:[%s351_s25 + $0x70] sm:$0xff] %v440_v14 }
  0x47   : > { %443 = vst [vmem:[%s351_s25 + $0x78] sm:$0xff] %v442_v15 }
  0x48 PF: > { %s457_s27 = sand.u32 1, %s1526_s18   ;;  %s1196_s10 = sshll.u32 %s1538_s21, 3 }
  0x49   : > { %s1195_s24 = sshll.u32 %s457_s27, 7  ;;  %s465_s1 = scalar_lea.hbm %s2037_s4, %s1196_s10 }
  0x4a   : > { %s466_s11 = sshll.u32 %s465_s1, 4  ;;  %s461_s9 = scalar_lea.vmem [#allocation7], %s1195_s24  ;;  %s467_s11 = int_to_ptr.hbm [resolvable:$true] %s466_s11 }
  0x4b   : > { %s468_s15 = sshll.u32 %s461_s9, 4  ;;  %s458_s22 = scalar_lea.sflag [#allocation8], %s457_s27  ;;  %s469_s15 = int_to_ptr.vmem [resolvable:$true] %s468_s15 }
  0x4c   : > { %s1548_s25 = smov 256   ;;  %s1549_s16 = smov 128  }
  0x4d   : > { %s1550_s13 = smov 8   ;;  %s1224_s29 = sshll.u32 %s1538_s21, 7 }
  0x4e   : > { %1259 = dma.hbm_to_vmem [thread:$0]  (%p1675_p3), %s467_s11, 2048, %s469_s15, %s458_s22, %s1548_s25, %s1549_s16, %s1550_s13  }
  0x4f   : > { %s494_s2 = scalar_lea.hbm %s2040_s7, %s1224_s29  ;;  %s489_s8 = scalar_lea.vmem [#allocation10], %s1195_s24 }
  0x50   : > { %s497_s26 = sshll.u32 %s489_s8, 4  ;;  %s495_s10 = sshll.u32 %s494_s2, 4  ;;  %s498_s26 = int_to_ptr.vmem [resolvable:$true] %s497_s26  ;;  %s496_s10 = int_to_ptr.hbm [resolvable:$true] %s495_s10 }
  0x51   : > { %s486_s1 = scalar_lea.sflag [#allocation11], %s457_s27 }
  0x52   : > { %1260 = dma.hbm_to_vmem [thread:$0]  (%p1675_p3), %s496_s10, 2048, %s498_s26, %s486_s1, %s1549_s16, %s1549_s16, %s1550_s13  }
  0x53 PF: > { %p1200_p4 = scmp.ge.s32.totalorder %s1546_s23, 1  ;;  %p514_p5 = scmp.lt.s32.totalorder %s1546_s23, 5 }
  0x55   : > { %p515_p6 = pnand %p1200_p4, %p514_p5 }
  0x56   : > { %s521_s9 = sand.u32 (!%p515_p6), 1, %s1522_s17  }
  0x57   : > { %518 = sbr.rel (%p515_p6) target bundleno = 745 (0x2e9), region = 94  ;;  %s1201_s5 = sshll.u32 (!%p515_p6), %s521_s9, 7 }
  0x58   : > { %s1749_s15 = scalar_lea.vmem (!%p515_p6), [#allocation6], %s1201_s5  ;;  %s528_s8 = scalar_lea.sflag (!%p515_p6), [#allocation8], %s521_s9 }
  0x59   : > { %s1751_s2 = scalar_lea.vmem (!%p515_p6), [#allocation7], %s1201_s5 }
  0x5c   : > { %1493 = dma.done.wait (%p1685_p8), %s528_s8, 2048  }
  0x5d   : > { %1495 = vsyncadd (%p1685_p8), %s528_s8, 4294965248  ;;  %s538_s13 = scalar_lea.sflag [#allocation11], %s521_s9  ;;  %s1757_s18 = scalar_lea.vmem [#allocation10], %s1201_s5 }
  0x5e   : > { %1497 = dma.done.wait (%p1685_p8), %s538_s13, 2048  }
  0x5f   : > { %1499 = vsyncadd (%p1685_p8), %s538_s13, 4294965248  ;;  %s1205_s30 = sshll.u32 %s1534_s20, 1  ;;  %s2056_s11 = sand.u32 1, %s1510_s14  }
  0x60   : > { %p607_p3 = scmp.lt.s32.totalorder %s1205_s30, 3  ;;  %s1204_s29 = sshll.u32 %s2056_s11, 4 }
  0x61   : > { %p612_p7 = scmp.lt.s32.totalorder %s1530_s19, 1  ;;  %s1209_s24 = sshll.u32 %s1530_s19, 4 }
  0x62   : > { %s2107_s30 = smov (!%p607_p3, %s1205_s30), 3  ;;  %p622_p8 = scmp.lt.s32.totalorder %s1209_s24, 31 }
  0x63   : > { %s613_s16 = scalar_select %p612_p7, %s1530_s19, 1 }
  0x64   : > { %s1206_s27 = sshll.u32 %s2107_s30, 3  ;;  %s2109_s24 = smov (!%p622_p8, %s1209_s24), 31 }
  0x65   : > { %s610_s12 = scalar_lea.vmem %s2033_s0, %s1206_s27  ;;  %s1207_s25 = sshll.u32 %s613_s16, 3 }
  0x66   : > { %v1773_v16 = vld [vmem:[%s610_s12] sm:$0xff]  ;;  %v1775_v17 = vld [vmem:[%s610_s12 + $0x8] sm:$0xff]  ;;  %s1780_s1 = scalar_lea.vmem %s2036_s3, %s1207_s25  ;;  %s1785_s8 = scalar_lea.vmem %s2039_s6, %s1207_s25 }
  0x67   : > { %s1210_s13 = sshll.u32 %s2109_s24, 3  ;;  %s2078_s16 = sld [smem:[#allocation29_spill]] }
  0x68   : > { %s1792_s22 = scalar_lea.vmem [#allocation12], %s1204_s29  ;;  %p1211_p9 = scmp.ne.s32.totalorder %s1530_s19, 0 }
  0x69   : > { %s2079_s10 = sld [smem:[#allocation27_spill]] (!%p1211_p9) }
  0x6a   : > { %633 = sbr.rel (%p1211_p9) target bundleno = 277 (0x115), region = 110  ;;  %s2080_s5 = sld [smem:[#allocation28_spill]] (!%p1211_p9) }
  0x6d   : > { %s1790_s28 = scalar_lea.vmem %s2078_s16, %s1210_s13 }
  0x6f   : > { %v649_v18 = vld [vmem:[%s2079_s10 + $0x78] sm:$0xff]  ;;  %v648_v20 = vld [vmem:[%s2079_s10 + $0x70] sm:$0xff]  ;;  %v647_v22 = vld [vmem:[%s2079_s10 + $0x68] sm:$0xff]  ;;  %vm673_vm0 = vcmask 64512   ;;  %v1551_v50 = vmov 0.0  }
  0x70   : > { %v691_v19 = vld [vmem:[%s2080_s5 + $0x78] sm:$0xff]  ;;  %1226 = vmatpush.msra.mxu2 %v649_v18  ;;  %v690_v21 = vld [vmem:[%s2080_s5 + $0x70] sm:$0xff]  ;;  %v689_v23 = vld [vmem:[%s2080_s5 + $0x68] sm:$0xff]  ;;  %650 = vmatpush.msra.mxu0 %v649_v18  ;;  %717 = vst [vmem:[#allocation4] sm:$0xff] %v1551_v50 }
  0x71   : > { %1242 = vmatpush.msra.mxu3 %v691_v19  ;;  %692 = vmatpush.msra.mxu1 %v691_v19  ;;  %v646_v24 = vld [vmem:[%s2079_s10 + $0x60] sm:$0xff]  ;;  %v645_v26 = vld [vmem:[%s2079_s10 + $0x58] sm:$0xff]  ;;  %v644_v28 = vld [vmem:[%s2079_s10 + $0x50] sm:$0xff]  ;;  %718 = vst [vmem:[#allocation4 + $0x8] sm:$0xff] %v1551_v50 }
  0x72   : > { %1227 = vmatpush.msra.mxu2 %v648_v20  ;;  %v688_v25 = vld [vmem:[%s2080_s5 + $0x60] sm:$0xff]  ;;  %651 = vmatpush.msra.mxu0 %v648_v20  ;;  %v687_v27 = vld [vmem:[%s2080_s5 + $0x58] sm:$0xff]  ;;  %v686_v29 = vld [vmem:[%s2080_s5 + $0x50] sm:$0xff]  ;;  %719 = vst.msk [vmem:[#allocation5] sm:$0xff] %vm673_vm0, %v1551_v50 }
  0x73   : > { %1243 = vmatpush.msra.mxu3 %v690_v21  ;;  %693 = vmatpush.msra.mxu1 %v690_v21  ;;  %v643_v30 = vld [vmem:[%s2079_s10 + $0x48] sm:$0xff]  ;;  %v642_v32 = vld [vmem:[%s2079_s10 + $0x40] sm:$0xff]  ;;  %v641_v34 = vld [vmem:[%s2079_s10 + $0x38] sm:$0xff]  ;;  %720 = vst.msk [vmem:[#allocation5 + $0x8] sm:$0xff] %vm673_vm0, %v1551_v50 }
  0x74   : > { %1228 = vmatpush.msra.mxu2 %v647_v22  ;;  %652 = vmatpush.msra.mxu0 %v647_v22  ;;  %v685_v31 = vld [vmem:[%s2080_s5 + $0x48] sm:$0xff]  ;;  %v684_v33 = vld [vmem:[%s2080_s5 + $0x40] sm:$0xff]  ;;  %v683_v35 = vld [vmem:[%s2080_s5 + $0x38] sm:$0xff] }
  0x75   : > { %1244 = vmatpush.msra.mxu3 %v689_v23  ;;  %694 = vmatpush.msra.mxu1 %v689_v23  ;;  %v640_v36 = vld [vmem:[%s2079_s10 + $0x30] sm:$0xff]  ;;  %v639_v38 = vld [vmem:[%s2079_s10 + $0x28] sm:$0xff]  ;;  %v638_v40 = vld [vmem:[%s2079_s10 + $0x20] sm:$0xff] }
  0x76   : > { %1229 = vmatpush.msra.mxu2 %v646_v24  ;;  %653 = vmatpush.msra.mxu0 %v646_v24  ;;  %v682_v37 = vld [vmem:[%s2080_s5 + $0x30] sm:$0xff]  ;;  %v681_v39 = vld [vmem:[%s2080_s5 + $0x28] sm:$0xff]  ;;  %v680_v41 = vld [vmem:[%s2080_s5 + $0x20] sm:$0xff] }
  0x77   : > { %1245 = vmatpush.msra.mxu3 %v688_v25  ;;  %695 = vmatpush.msra.mxu1 %v688_v25  ;;  %v637_v42 = vld [vmem:[%s2079_s10 + $0x18] sm:$0xff]  ;;  %v636_v44 = vld [vmem:[%s2079_s10 + $0x10] sm:$0xff]  ;;  %v635_v46 = vld [vmem:[%s2079_s10 + $0x8] sm:$0xff] }
  0x78   : > { %1230 = vmatpush.msra.mxu2 %v645_v26  ;;  %654 = vmatpush.msra.mxu0 %v645_v26  ;;  %v679_v43 = vld [vmem:[%s2080_s5 + $0x18] sm:$0xff]  ;;  %v678_v45 = vld [vmem:[%s2080_s5 + $0x10] sm:$0xff]  ;;  %v677_v47 = vld [vmem:[%s2080_s5 + $0x8] sm:$0xff] }
  0x79   : > { %1246 = vmatpush.msra.mxu3 %v687_v27  ;;  %696 = vmatpush.msra.mxu1 %v687_v27  ;;  %v634_v48 = vld [vmem:[%s2079_s10] sm:$0xff] }
  0x7a   : > { %1231 = vmatpush.msra.mxu2 %v644_v28  ;;  %655 = vmatpush.msra.mxu0 %v644_v28  ;;  %v676_v49 = vld [vmem:[%s2080_s5] sm:$0xff] }
  0x7b   : > { %1247 = vmatpush.msra.mxu3 %v686_v29  ;;  %697 = vmatpush.msra.mxu1 %v686_v29 }
  0x7c   : > { %1232 = vmatpush.msra.mxu2 %v643_v30  ;;  %656 = vmatpush.msra.mxu0 %v643_v30 }
  0x7d   : > { %1248 = vmatpush.msra.mxu3 %v685_v31  ;;  %698 = vmatpush.msra.mxu1 %v685_v31 }
  0x7e   : > { %1233 = vmatpush.msra.mxu2 %v642_v32  ;;  %657 = vmatpush.msra.mxu0 %v642_v32 }
  0x7f   : > { %1249 = vmatpush.msra.mxu3 %v684_v33  ;;  %699 = vmatpush.msra.mxu1 %v684_v33 }
  0x80   : > { %1234 = vmatpush.msra.mxu2 %v641_v34  ;;  %658 = vmatpush.msra.mxu0 %v641_v34 }
  0x81   : > { %1250 = vmatpush.msra.mxu3 %v683_v35  ;;  %700 = vmatpush.msra.mxu1 %v683_v35 }
  0x82   : > { %1235 = vmatpush.msra.mxu2 %v640_v36  ;;  %659 = vmatpush.msra.mxu0 %v640_v36 }
  0x83   : > { %1251 = vmatpush.msra.mxu3 %v682_v37  ;;  %701 = vmatpush.msra.mxu1 %v682_v37 }
  0x84   : > { %1236 = vmatpush.msra.mxu2 %v639_v38  ;;  %660 = vmatpush.msra.mxu0 %v639_v38 }
  0x85   : > { %1252 = vmatpush.msra.mxu3 %v681_v39  ;;  %702 = vmatpush.msra.mxu1 %v681_v39 }
  0x86   : > { %1237 = vmatpush.msra.mxu2 %v638_v40  ;;  %661 = vmatpush.msra.mxu0 %v638_v40 }
  0x87   : > { %1253 = vmatpush.msra.mxu3 %v680_v41  ;;  %703 = vmatpush.msra.mxu1 %v680_v41 }
  0x88   : > { %1238 = vmatpush.msra.mxu2 %v637_v42  ;;  %662 = vmatpush.msra.mxu0 %v637_v42 }
  0x89   : > { %1254 = vmatpush.msra.mxu3 %v679_v43  ;;  %704 = vmatpush.msra.mxu1 %v679_v43 }
  0x8a   : > { %1239 = vmatpush.msra.mxu2 %v636_v44  ;;  %663 = vmatpush.msra.mxu0 %v636_v44 }
  0x8b   : > { %1255 = vmatpush.msra.mxu3 %v678_v45  ;;  %705 = vmatpush.msra.mxu1 %v678_v45 }
  0x8c   : > { %1240 = vmatpush.msra.mxu2 %v635_v46  ;;  %664 = vmatpush.msra.mxu0 %v635_v46 }
  0x8d   : > { %1256 = vmatpush.msra.mxu3 %v677_v47  ;;  %706 = vmatpush.msra.mxu1 %v677_v47 }
  0x8e   : > { %1241 = vmatpush.msra.mxu2 %v634_v48  ;;  %665 = vmatpush.msra.mxu0 %v634_v48 }
  0x8f   : > { %1257 = vmatpush.msra.mxu3 %v676_v49  ;;  %669 = vmatmul.f32.vlgmr.msra.gmra.mxu2 %v1775_v17 }
  0x90   : > { %711 = vmatmul.f32.vlgmr.msra.gmra.mxu3 %v1775_v17  ;;  %707 = vmatpush.msra.mxu1 %v676_v49 }
  0x91   : > { %666 = vmatmul.f32.vlgmr.msra.gmra.mxu0 %v1773_v16  ;;  %708 = vmatmul.f32.vlgmr.msra.gmra.mxu1 %v1773_v16 }
 0x10e   : > { %v667_v51 = vpop.f32.mrf.mxu0  ;;  %v709_v52 = vpop.f32.mrf.mxu1 }
 0x10f   : > { %674 = vst.msk [vmem:[#allocation2] sm:$0xff] %vm673_vm0, %v667_v51 }
 0x110   : > { %715 = vst.msk [vmem:[#allocation3] sm:$0xff] %vm673_vm0, %v709_v52 }
 0x112   : > { %v670_v53 = vpop.f32.mrf.mxu2 }
 0x113   : > { %v712_v54 = vpop.f32.mrf.mxu3  ;;  %675 = vst.msk [vmem:[#allocation2 + $0x8] sm:$0xff] %vm673_vm0, %v670_v53 }
 0x114   : > { %716 = vst.msk [vmem:[#allocation3 + $0x8] sm:$0xff] %vm673_vm0, %v712_v54 }
 0x115 PF: > { %v808_v55 = vld [vmem:[%s1751_s2 + $0x78] sm:$0xff]  ;;  %v807_v56 = vld [vmem:[%s1751_s2 + $0x70] sm:$0xff]  ;;  %v806_v59 = vld [vmem:[%s1751_s2 + $0x68] sm:$0xff]  ;;  %vm740_vm1 = vcmask 64512   ;;  %p1216_p10 = scmp.ne.s32.totalorder %s1530_s19, 1 }
 0x116   : > { %v736_v57 = vld [vmem:[%s1749_s15 + $0x78] sm:$0xff]  ;;  %841 = vmatpush.msra.mxu3 %v808_v55  ;;  %v735_v58 = vld [vmem:[%s1749_s15 + $0x70] sm:$0xff]  ;;  %v734_v60 = vld [vmem:[%s1749_s15 + $0x68] sm:$0xff] }
 0x117   : > { %770 = vmatpush.msra.mxu1 %v736_v57  ;;  %v805_v61 = vld [vmem:[%s1751_s2 + $0x60] sm:$0xff]  ;;  %v804_v63 = vld [vmem:[%s1751_s2 + $0x58] sm:$0xff]  ;;  %v803_v1 = vld [vmem:[%s1751_s2 + $0x50] sm:$0xff] }
 0x118   : > { %842 = vmatpush.msra.mxu3 %v807_v56  ;;  %v733_v62 = vld [vmem:[%s1749_s15 + $0x60] sm:$0xff]  ;;  %v732_v0 = vld [vmem:[%s1749_s15 + $0x58] sm:$0xff]  ;;  %v731_v2 = vld [vmem:[%s1749_s15 + $0x50] sm:$0xff] }
 0x119   : > { %771 = vmatpush.msra.mxu1 %v735_v58  ;;  %v811_v3 = vld [vmem:[%s1785_s8] sm:$0xff]  ;;  %v802_v4 = vld [vmem:[%s1751_s2 + $0x48] sm:$0xff]  ;;  %v809_v6 = vld [vmem:[#allocation3] sm:$0xff] }
 0x11a   : > { %843 = vmatpush.msra.mxu3 %v806_v59  ;;  %v730_v5 = vld [vmem:[%s1749_s15 + $0x48] sm:$0xff]  ;;  %833 = vmatpush.msra.mxu2 %v811_v3  ;;  %v739_v7 = vld [vmem:[%s1780_s1] sm:$0xff]  ;;  %v885_v11 = vld [vmem:[%s1757_s18 + $0x78] sm:$0xff] }
 0x11b   : > { %772 = vmatpush.msra.mxu1 %v734_v60  ;;  %v737_v8 = vld [vmem:[#allocation2] sm:$0xff]  ;;  %1214 = vmatmul.msk.f32.vlgmr.msra.gmra.mxu2 %vm740_vm1, %v809_v6  ;;  %v930_v12 = vld [vmem:[%s1790_s28 + $0x78] sm:$0xff]  ;;  %v929_v13 = vld [vmem:[%s1790_s28 + $0x70] sm:$0xff] }
 0x11c   : > { %844 = vmatpush.msra.mxu3 %v805_v61  ;;  %v801_v9 = vld [vmem:[%s1751_s2 + $0x40] sm:$0xff]  ;;  %762 = vmatpush.msra.mxu0 %v739_v7  ;;  %v800_v14 = vld [vmem:[%s1751_s2 + $0x38] sm:$0xff]  ;;  %v884_v18 = vld [vmem:[%s1757_s18 + $0x70] sm:$0xff] }
 0x11d   : > { %773 = vmatpush.msra.mxu1 %v733_v62  ;;  %v729_v10 = vld [vmem:[%s1749_s15 + $0x40] sm:$0xff]  ;;  %v728_v15 = vld [vmem:[%s1749_s15 + $0x38] sm:$0xff]  ;;  %1212 = vmatmul.msk.f32.vlgmr.msra.gmra.mxu0 %vm740_vm1, %v737_v8  ;;  %v928_v19 = vld [vmem:[%s1790_s28 + $0x68] sm:$0xff] }
 0x11e   : > { %845 = vmatpush.msra.mxu3 %v804_v63  ;;  %931 = vmatpush.msrb.mxu2 %v930_v12  ;;  %v799_v20 = vld [vmem:[%s1751_s2 + $0x30] sm:$0xff]  ;;  %v810_v22 = vld [vmem:[#allocation3 + $0x8] sm:$0xff]  ;;  %v883_v23 = vld [vmem:[%s1757_s18 + $0x68] sm:$0xff] }
 0x11f   : > { %774 = vmatpush.msra.mxu1 %v732_v0  ;;  %v727_v21 = vld [vmem:[%s1749_s15 + $0x30] sm:$0xff]  ;;  %886 = vmatpush.msrb.mxu0 %v885_v11  ;;  %v798_v24 = vld [vmem:[%s1751_s2 + $0x28] sm:$0xff]  ;;  %v927_v27 = vld [vmem:[%s1790_s28 + $0x60] sm:$0xff] }
 0x120   : > { %846 = vmatpush.msra.mxu3 %v803_v1  ;;  %932 = vmatpush.msrb.mxu2 %v929_v13  ;;  %v726_v25 = vld [vmem:[%s1749_s15 + $0x28] sm:$0xff]  ;;  %v797_v28 = vld [vmem:[%s1751_s2 + $0x20] sm:$0xff]  ;;  %v926_v31 = vld [vmem:[%s1790_s28 + $0x58] sm:$0xff] }
 0x121   : > { %775 = vmatpush.msra.mxu1 %v731_v2  ;;  %887 = vmatpush.msrb.mxu0 %v884_v18  ;;  %v738_v26 = vld [vmem:[#allocation2 + $0x8] sm:$0xff]  ;;  %v725_v29 = vld [vmem:[%s1749_s15 + $0x20] sm:$0xff]  ;;  %v796_v32 = vld [vmem:[%s1751_s2 + $0x18] sm:$0xff] }
 0x122   : > { %847 = vmatpush.msra.mxu3 %v802_v4  ;;  %933 = vmatpush.msrb.mxu2 %v928_v19  ;;  %v882_v30 = vld [vmem:[%s1757_s18 + $0x60] sm:$0xff]  ;;  %v724_v33 = vld [vmem:[%s1749_s15 + $0x18] sm:$0xff]  ;;  %v925_v35 = vld [vmem:[%s1790_s28 + $0x50] sm:$0xff] }
 0x123   : > { %776 = vmatpush.msra.mxu1 %v730_v5  ;;  %1215 = vmatmul.msk.f32.gmra.mxu2 %vm740_vm1, %v810_v22  ;;  %v881_v34 = vld [vmem:[%s1757_s18 + $0x58] sm:$0xff]  ;;  %v795_v36 = vld [vmem:[%s1751_s2 + $0x10] sm:$0xff]  ;;  %v924_v39 = vld [vmem:[%s1790_s28 + $0x48] sm:$0xff] }
 0x124   : > { %848 = vmatpush.msra.mxu3 %v801_v9  ;;  %888 = vmatpush.msrb.mxu0 %v883_v23  ;;  %v723_v37 = vld [vmem:[%s1749_s15 + $0x10] sm:$0xff]  ;;  %v794_v40 = vld [vmem:[%s1751_s2 + $0x8] sm:$0xff]  ;;  %v923_v43 = vld [vmem:[%s1790_s28 + $0x40] sm:$0xff] }
 0x125   : > { %777 = vmatpush.msra.mxu1 %v729_v10  ;;  %1213 = vmatmul.msk.f32.gmra.mxu0 %vm740_vm1, %v738_v26  ;;  %v880_v38 = vld [vmem:[%s1757_s18 + $0x50] sm:$0xff]  ;;  %v722_v41 = vld [vmem:[%s1749_s15 + $0x8] sm:$0xff]  ;;  %v793_v44 = vld [vmem:[%s1751_s2] sm:$0xff] }
 0x126   : > { %849 = vmatpush.msra.mxu3 %v800_v14  ;;  %934 = vmatpush.msrb.mxu2 %v927_v27  ;;  %v879_v42 = vld [vmem:[%s1757_s18 + $0x48] sm:$0xff]  ;;  %v721_v45 = vld [vmem:[%s1749_s15] sm:$0xff]  ;;  %v922_v47 = vld [vmem:[%s1790_s28 + $0x38] sm:$0xff] }
 0x127   : > { %778 = vmatpush.msra.mxu1 %v728_v15  ;;  %889 = vmatpush.msrb.mxu0 %v882_v30  ;;  %v878_v46 = vld [vmem:[%s1757_s18 + $0x40] sm:$0xff]  ;;  %v877_v48 = vld [vmem:[%s1757_s18 + $0x38] sm:$0xff]  ;;  %v921_v49 = vld [vmem:[%s1790_s28 + $0x30] sm:$0xff] }
 0x128   : > { %850 = vmatpush.msra.mxu3 %v799_v20  ;;  %935 = vmatpush.msrb.mxu2 %v926_v31  ;;  %v876_v50 = vld [vmem:[%s1757_s18 + $0x30] sm:$0xff]  ;;  %v920_v51 = vld [vmem:[%s1790_s28 + $0x28] sm:$0xff]  ;;  %v919_v53 = vld [vmem:[%s1790_s28 + $0x20] sm:$0xff] }
 0x129   : > { %779 = vmatpush.msra.mxu1 %v727_v21  ;;  %890 = vmatpush.msrb.mxu0 %v881_v34  ;;  %v875_v52 = vld [vmem:[%s1757_s18 + $0x28] sm:$0xff]  ;;  %v874_v54 = vld [vmem:[%s1757_s18 + $0x20] sm:$0xff]  ;;  %v918_v55 = vld [vmem:[%s1790_s28 + $0x18] sm:$0xff] }
 0x12a   : > { %851 = vmatpush.msra.mxu3 %v798_v24  ;;  %936 = vmatpush.msrb.mxu2 %v925_v35  ;;  %v872_v56 = vld [vmem:[%s1757_s18 + $0x10] sm:$0xff]  ;;  %v871_v58 = vld [vmem:[%s1757_s18 + $0x8] sm:$0xff]  ;;  %v870_v60 = vld [vmem:[%s1757_s18] sm:$0xff] }
 0x12b   : > { %780 = vmatpush.msra.mxu1 %v726_v25  ;;  %891 = vmatpush.msrb.mxu0 %v880_v38  ;;  %v917_v57 = vld [vmem:[%s1790_s28 + $0x10] sm:$0xff]  ;;  %v916_v59 = vld [vmem:[%s1790_s28 + $0x8] sm:$0xff]  ;;  %v915_v61 = vld [vmem:[%s1790_s28] sm:$0xff] }
 0x12c   : > { %852 = vmatpush.msra.mxu3 %v797_v28  ;;  %937 = vmatpush.msrb.mxu2 %v924_v39  ;;  %v868_v13 = vld [vmem:[#allocation4] sm:$0xff]  ;;  %v913_v18 = vld [vmem:[#allocation5] sm:$0xff]  ;;  %v869_v20 = vld [vmem:[#allocation4 + $0x8] sm:$0xff] }
 0x12d   : > { %781 = vmatpush.msra.mxu1 %v725_v29  ;;  %892 = vmatpush.msrb.mxu0 %v879_v42  ;;  %v914_v24 = vld [vmem:[#allocation5 + $0x8] sm:$0xff] }
 0x12e   : > { %853 = vmatpush.msra.mxu3 %v796_v32  ;;  %938 = vmatpush.msrb.mxu2 %v923_v43 }
 0x12f   : > { %782 = vmatpush.msra.mxu1 %v724_v33  ;;  %893 = vmatpush.msrb.mxu0 %v878_v46 }
 0x130   : > { %854 = vmatpush.msra.mxu3 %v795_v36  ;;  %939 = vmatpush.msrb.mxu2 %v922_v47 }
 0x131   : > { %783 = vmatpush.msra.mxu1 %v723_v37  ;;  %894 = vmatpush.msrb.mxu0 %v877_v48 }
 0x132   : > { %855 = vmatpush.msra.mxu3 %v794_v40  ;;  %940 = vmatpush.msrb.mxu2 %v921_v49 }
 0x133   : > { %784 = vmatpush.msra.mxu1 %v722_v41  ;;  %895 = vmatpush.msrb.mxu0 %v876_v50 }
 0x134   : > { %856 = vmatpush.msra.mxu3 %v793_v44  ;;  %941 = vmatpush.msrb.mxu2 %v920_v51 }
 0x135   : > { %785 = vmatpush.msra.mxu1 %v721_v45  ;;  %857 = vmatmul.f32.vlgmr.msra.gmra.mxu3 %v1773_v16 }
 0x136   : > { %786 = vmatmul.f32.vlgmr.msra.gmra.mxu1 %v1773_v16  ;;  %896 = vmatpush.msrb.mxu0 %v875_v52  ;;  %v873_v16 = vld [vmem:[%s1757_s18 + $0x18] sm:$0xff]  ;;  %s2081_s18 = sld [smem:[#allocation30_spill]] (!%p1216_p10) }
 0x137   : > { %942 = vmatpush.msrb.mxu2 %v919_v53 }
 0x138   : > { %897 = vmatpush.msrb.mxu0 %v874_v54 }
 0x139   : > { %943 = vmatpush.msrb.mxu2 %v918_v55 }
 0x13a   : > { %898 = vmatpush.msrb.mxu0 %v873_v16 }
 0x13b   : > { %944 = vmatpush.msrb.mxu2 %v917_v57 }
 0x13c   : > { %899 = vmatpush.msrb.mxu0 %v872_v56 }
 0x13d   : > { %860 = vmatmul.f32.gmra.mxu3 %v1775_v17  ;;  %945 = vmatpush.msrb.mxu2 %v916_v59 }
 0x13e   : > { %789 = vmatmul.f32.gmra.mxu1 %v1775_v17  ;;  %900 = vmatpush.msrb.mxu0 %v871_v58 }
 0x13f   : > { %946 = vmatpush.msrb.mxu2 %v915_v61 }
 0x140   : > { %901 = vmatpush.msrb.mxu0 %v870_v60 }
 0x19a   : > { %v764_v62 = vpop.f32.mrf.mxu0 }
 0x19e   : > { %v835_v0 = vpop.f32.mrf.mxu2 }
 0x1a2   : > { %v767_v3 = vpop.f32.mrf.mxu0 }
 0x1a6   : > { %v838_v8 = vpop.f32.mrf.mxu2 }
 0x1b3   : > { %v787_v63 = vpop.f32.mrf.mxu1 }
 0x1b4   : > { %v788_v17 = vadd.f32 %v787_v63, %v764_v62 }
 0x1b6   : > { %v864_v1 = vmax.f32 %v788_v17, 0.0 }
 0x1b8   : > { %v858_v2 = vpop.f32.mrf.mxu3 }
 0x1b9   : > { %v859_v4 = vadd.f32 %v858_v2, %v835_v0 }
 0x1bb   : > { %v790_v5 = vpop.f32.mrf.mxu1  ;;  %v866_v6 = vmul.f32 %v864_v1, %v859_v4 }
 0x1bc   : > { %v791_v7 = vadd.f32 %v790_v5, %v767_v3 }
 0x1bd   : > { %902 = vmatmul.f32.vlgmr.msrb.gmra.mxu0 %v866_v6  ;;  %947 = vmatmul.f32.vlgmr.msrb.gmra.mxu2 %v866_v6 }
 0x1be   : > { %v865_v9 = vmax.f32 %v791_v7, 0.0 }
 0x1c0   : > { %v861_v10 = vpop.f32.mrf.mxu3 }
 0x1c1   : > { %v862_v11 = vadd.f32 %v861_v10, %v838_v8 }
 0x1c3   : > { %v867_v12 = vmul.f32 %v865_v9, %v862_v11 }
 0x1c5   : > { %905 = vmatmul.f32.gmra.mxu0 %v867_v12  ;;  %950 = vmatmul.f32.gmra.mxu2 %v867_v12 }
 0x23a   : > { %v903_v14 = vpop.f32.mrf.mxu0 }
 0x23b   : > { %v909_v15 = vadd.f32 %v903_v14, %v868_v13 }
 0x23d   : > { %911 = vst [vmem:[#allocation4] sm:$0xff] %v909_v15 }
 0x240   : > { %v948_v19 = vpop.f32.mrf.mxu2 }
 0x241   : > { %v954_v21 = vadd.f32 %v948_v19, %v913_v18 }
 0x242   : > { %v906_v22 = vpop.f32.mrf.mxu0 }
 0x243   : > { %956 = vst.msk [vmem:[#allocation5] sm:$0xff] %vm740_vm1, %v954_v21  ;;  %v910_v23 = vadd.f32 %v906_v22, %v869_v20 }
 0x245   : > { %912 = vst [vmem:[#allocation4 + $0x8] sm:$0xff] %v910_v23 }
 0x247   : > { %961 = sbr.rel (%p1216_p10) target bundleno = 724 (0x2d4), region = 114 }
 0x248   : > { %v951_v25 = vpop.f32.mrf.mxu2 }
 0x249   : > { %v955_v26 = vadd.f32 %v951_v25, %v914_v24 }
 0x24b   : > { %957 = vst.msk [vmem:[#allocation5 + $0x8] sm:$0xff] %vm740_vm1, %v955_v26 }
 0x24c   : > { %v966_v27 = vld [vmem:[%s2081_s18] sm:$0xff]  ;;  %v964_v28 = vld [vmem:[#allocation5] sm:$0xff]  ;;  %v963_v31 = vld [vmem:[#allocation4 + $0x8] sm:$0xff] }
 0x24d   : > { %988 = vmatpush.msra.mxu0 %v966_v27  ;;  %1258 = vmatpush.msra.mxu1 %v966_v27  ;;  %v962_v30 = vld [vmem:[#allocation4] sm:$0xff] }
 0x24e   : > { %1217 = vmatmul.msk.f32.vlgmr.msra.gmra.mxu0 %vm740_vm1, %v964_v28 }
 0x252   : > { %v965_v29 = vld [vmem:[#allocation5 + $0x8] sm:$0xff] }
 0x253   : > { %1218 = vmatmul.msk.f32.vlgmr.msra.gmra.mxu1 %vm740_vm1, %v965_v29 }
 0x2cb   : > { %v990_v32 = vpop.f32.mrf.mxu0 }
 0x2cc   : > { %v996_v34 = vadd.f32 %v990_v32, %v962_v30 }
 0x2ce   : > { %998 = vst [vmem:[%s1792_s22] sm:$0xff] %v996_v34 }
 0x2d0   : > { %v993_v33 = vpop.f32.mrf.mxu1 }
 0x2d1   : > { %v997_v35 = vadd.f32 %v993_v33, %v963_v31 }
 0x2d3   : > { %999 = vst [vmem:[%s1792_s22 + $0x8] sm:$0xff] %v997_v35 }
 0x2d4 PF: > { %s1225_s1 = sshll.u32 %s1534_s20, 4  ;;  %s2083_s27 = sld [smem:[#allocation31_spill]] }
 0x2d5   : > { %s1013_s12 = sshll.u32 %s1792_s22, 4  ;;  %s2084_s26 = sand.u32 1, %s1510_s14   ;;  %s1014_s12 = int_to_ptr.vmem [resolvable:$true] %s1013_s12 }
 0x2d6   : > { %s1001_s9 = scalar_lea.sflag [#allocation9], %s2084_s26 }
 0x2da   : > { %s1012_s16 = scalar_lea.hbm %s2083_s27, %s1225_s1  ;;  %s1440_s20 = scalar_lea.hbm %s2083_s27, 32 }
 0x2db   : > { %s1015_s11 = sshll.u32 %s1012_s16, 4  ;;  %s1016_s11 = int_to_ptr.hbm [resolvable:$true] %s1015_s11 }
 0x2dc   : > { %s1434_s25 = sshra.s32 %s1016_s11, 4  ;;  %s1435_s25 = int_to_ptr.hbm [resolvable:$true] %s1434_s25 }
 0x2dd   : > { %s1436_s24 = scalar_lea.hbm %s1435_s25, 16  ;;  %p1441_p2 = scmp.lt.s32.totalorder %s1435_s25, %s2083_s27 }
 0x2de   : > { %p1437_p11 = scmp.ne.s32.totalorder %s1435_s25, %s1436_s24  ;;  %p1442_p4 = scmp.lt.s32.totalorder %s1440_s20, %s1436_s24 }
 0x2e0   : > { %p1438_p13 = pnand %p1437_p11, %p1697_p12  ;;  %p1443_p5 = por %p1442_p4, %p1441_p2 }
 0x2e2   : > { %p1439_p0 = pneg %p1438_p13 }
 0x2e4   : > { %p1444_p6 = pnand %p1443_p5, %p1439_p0 }
 0x2e6   : > { %1447 = shalt.err (!%p1444_p6)
}
 0x2e7   : > { %s1552_s22 = smov 128   ;;  %s1553_s2 = smov 8  }
 0x2e8   : > { %1263 = dma.vmem_to_hbm [thread:$0]  (%p1697_p12), %s1014_s12, 256, %s1016_s11, %s1001_s9, %s1552_s22, %s1552_s22, %s1553_s2  }
 0x2e9 PF: > { %s2085_s18 = sld [smem:[#allocation16_spill]]  ;;  %p1269_p3 = scmp.ge.s32.totalorder %s1546_s23, 2 }
 0x2eb   : > { %p1266_p7 = pnand %p1269_p3, %p1703_p1 }
 0x2ed   : > { %p1267_p8 = pneg %p1266_p7 }
 0x2ef   : > { %s1030_s8 = sand.u32 1, %s2085_s18  }
 0x2f0   : > { %s1031_s28 = scalar_lea.sflag [#allocation9], %s1030_s8 }
 0x2f1   : > { %1501 = dma.done.wait (%p1267_p8), %s1031_s28, 256  }
 0x2f2   : > { %1503 = vsyncadd (%p1267_p8), %s1031_s28, 4294967040  ;;  %s29_s23 = sadd.s32 1, %s1546_s23   ;;  %s2087_s16 = sld [smem:[#allocation17_spill]] }
 0x2f3   : > { %p26_p9 = scmp.ge.s32.totalorder %s29_s23, 6   ;;  %s2088_s15 = sld [smem:[#allocation23_spill]] }
 0x2f4   : > { %s2089_s19 = sld [smem:[#allocation18_spill]]  ;;  %s2094_s13 = smov %s1510_s14 }
 0x2f5   : > { %s2090_s18 = sld [smem:[#allocation22_spill]] }
 0x2f6   : > { %s2091_s20 = sld [smem:[#allocation19_spill]] }
 0x2f7   : > { %s2092_s12 = sld [smem:[#allocation20_spill]] }
 0x2f8   : > { %s2093_s22 = sld [smem:[#allocation21_spill]]  ;;  %s2095_s14 = smov %s2087_s16 }
 0x2f9   : > { %s2096_s16 = smov %s1522_s17  ;;  %28 = sbr.rel (!%p26_p9) target bundleno = 18 (0x12), region = 184 }
 0x2fa   : > { %s2097_s17 = smov %s2089_s19  ;;  %s2098_s19 = smov %s1538_s21 }
 0x2fd   : > { %s2099_s21 = smov %s2092_s12 }
 0x2fe   :  { %1037 = vsyncpa [#allocation8], 1 }
 0x2ff   :  { %1039 = vsyncpa [#allocation8 + $0x1], 1 }
 0x300   :  { %1040 = vsyncpa [#allocation11], 1 }
 0x301   :  { %1042 = vsyncpa [#allocation11 + $0x1], 1 }
 0x302   :  { %1043 = vsyncpa [#allocation9], 1 }
 0x303   :  { %1045 = vsyncpa [#allocation9 + $0x1], 1 }

</bundles_post_ra>
